<compile_context>
chip_gen: v5e
topology: v5e:2x2
jax: 0.10.0
libtpu: 0.0.40
codegen_flags: <defaults>
</compile_context>

<pallas_src>
import functools
import math

import jax
import jax.numpy as jnp
from jax.experimental import pallas as pl
from jax.experimental.pallas import tpu as pltpu


def _decomp_kernel(x_ref, res_ref, mean_ref, *, L, C, K, PAD):
    # Block layout: (rows, L*C); lane index = t*C + c (time-major, channel-minor).
    xv = x_ref[...].astype(jnp.float32)
    rows = xv.shape[0]
    W = L * C

    if PAD == 0:  # kernel_size == 1: moving mean is the identity
        mean_ref[...] = xv.astype(mean_ref.dtype)
        res_ref[...] = jnp.zeros(res_ref.shape, res_ref.dtype)
        return

    # Per-channel inclusive prefix sum along time: Hillis-Steele scan over
    # C-lane groups (ceil(log2 L) lane-shift + add passes, all lane-dense).
    cs = xv
    offset = 1
    while offset < L:
        sh = offset * C
        cs = cs + jnp.concatenate(
            [jnp.zeros((rows, sh), jnp.float32), cs[:, :W - sh]], axis=1)
        offset *= 2

    first_x = xv[:, :C]                # x[:, 0, :]
    last_x = xv[:, (L - 1) * C:]       # x[:, L-1, :]
    total = cs[:, (L - 1) * C:]        # per-channel full sum

    # upper[t] = cs[min(t + PAD, L - 1)]
    upper = jnp.concatenate([cs[:, PAD * C:]] + [total] * PAD, axis=1)

    # lower[t] = cs[t - PAD - 1] for t >= PAD + 1, else 0
    low_w = (L - PAD - 1) * C
    if low_w > 0:
        lower = jnp.concatenate(
            [jnp.zeros((rows, (PAD + 1) * C), jnp.float32), cs[:, :low_w]],
            axis=1)
    else:
        lower = jnp.zeros((rows, W), jnp.float32)

    # Edge-replication corrections: the first/last PAD time steps reuse
    # x[:, 0, :] / x[:, L-1, :] a known (compile-time) number of times.
    front = jnp.concatenate(
        [float(PAD - t) * first_x for t in range(PAD)], axis=1)
    end = jnp.concatenate(
        [float(t + 1) * last_x for t in range(PAD)], axis=1)
    mid_w = (L - 2 * PAD) * C
    pieces = [front]
    if mid_w > 0:
        pieces.append(jnp.zeros((rows, mid_w), jnp.float32))
    pieces.append(end)
    corr = jnp.concatenate(pieces, axis=1)

    mean = (upper - lower + corr) * (1.0 / K)
    mean_ref[...] = mean.astype(mean_ref.dtype)
    res_ref[...] = (xv - mean).astype(res_ref.dtype)


def _pick_batch_tile(batch, lane_width, itemsize):
    """Largest batch-row tile that keeps pipeline buffers + temps well under VMEM."""
    budget = 12 * 1024 * 1024          # below every chip's default scoped VMEM limit
    approx_live_bufs = 12              # 6 double-buffered I/O tiles + ~6 f32 temps
    per_row = lane_width * max(int(itemsize), 4)
    max_rows = max(1, budget // (approx_live_bufs * per_row))
    if batch <= max_rows:
        return int(batch)              # full extent: always a legal block dim
    tile = (max_rows // 8) * 8         # otherwise sublane dim must be a multiple of 8
    return int(max(tile, 8))


def series_decomp(x, kernel_size):
    """Returns (res, moving_mean), matching the PyTorch series_decomp forward."""
    assert kernel_size % 2 == 1, "odd kernel_size assumed (output length == input length)"
    B, L, C = x.shape
    pad = (kernel_size - 1) // 2
    assert 2 * pad <= L, "kernel_size must be <= seq_len + 1"
    # TODO(synk): support kernel_size > seq_len + 1 (overlapping edge corrections).

    W = L * C
    x2d = x.reshape(B, W)              # free reshape: lane-dense, no HBM copy
    tb = _pick_batch_tile(B, W, x.dtype.itemsize)
    grid = (pl.cdiv(B, tb),)

    kernel = functools.partial(_decomp_kernel, L=L, C=C, K=kernel_size, PAD=pad)

    scan_steps = max(1, math.ceil(math.log2(max(L, 2))))
    cost = pl.CostEstimate(
        flops=int((scan_steps + 6) * B * W),
        transcendentals=0,
        bytes_accessed=int(3 * B * W * x.dtype.itemsize),
    )

    res2d, mean2d = pl.pallas_call(
        kernel,
        out_shape=(
            jax.ShapeDtypeStruct((B, W), x.dtype),
            jax.ShapeDtypeStruct((B, W), x.dtype),
        ),
        grid=grid,
        in_specs=[pl.BlockSpec((tb, W), lambda b: (b, 0))],
        out_specs=(
            pl.BlockSpec((tb, W), lambda b: (b, 0)),
            pl.BlockSpec((tb, W), lambda b: (b, 0)),
        ),
        compiler_params=pltpu.CompilerParams(
            dimension_semantics=("parallel",)),
        cost_estimate=cost,
    )(x2d)
    return res2d.reshape(B, L, C), mean2d.reshape(B, L, C)


def _reference(x, kernel_size):
    # Pure-JAX reference mirroring the PyTorch code.
    pad = (kernel_size - 1) // 2
    front = jnp.repeat(x[:, 0:1, :], pad, axis=1)
    end = jnp.repeat(x[:, -1:, :], pad, axis=1)
    xp = jnp.concatenate([front, x, end], axis=1)
    L = x.shape[1]
    mean = sum(xp[:, i:i + L, :] for i in range(kernel_size)) / kernel_size
    return x - mean, mean


if __name__ == "__main__":
    key = jax.random.PRNGKey(0)
    B, L, C = 2, 16, 8
    kernel_size = 5
    x = jax.random.normal(key, (B, L, C), dtype=jnp.float32)

    res, mean = series_decomp(x, kernel_size)
    jax.block_until_ready((res, mean))

    res_ref, mean_ref = _reference(x, kernel_size)
    assert jnp.allclose(mean, mean_ref, atol=1e-5), "moving mean mismatch"
    assert jnp.allclose(res, res_ref, atol=1e-5), "residual mismatch"
    assert jnp.allclose(res + mean, x, atol=1e-5), "decomposition mismatch"

    print("KERNEL_OK")
</pallas_src>

<mosaic_0001>
module attributes {stable_mosaic.version = 11 : i64} {
  func.func @_decomp_kernel(%arg0: i32, %arg1: memref<2x128xf32, #tpu.memory_space<vmem>>, %arg2: memref<2x128xf32, #tpu.memory_space<vmem>>, %arg3: memref<2x128xf32, #tpu.memory_space<vmem>>) attributes {dimension_semantics = [#tpu.dimension_semantics<parallel>], iteration_bounds = array<i64: 1>, scalar_prefetch = 0 : i64, scratch_operands = 0 : i64, tpu.core_type = #tpu.core_type<tc>, window_params = [{transform_indices = @transform_0, window_bounds = array<i64: 2, 128>}, {transform_indices = @transform_1, window_bounds = array<i64: 2, 128>}, {transform_indices = @transform_2, window_bounds = array<i64: 2, 128>}]} {
    %c0 = arith.constant 0 : index
    %c0_0 = arith.constant 0 : index
    %0 = vector.load %arg1[%c0, %c0_0] : memref<2x128xf32, #tpu.memory_space<vmem>>, vector<2x128xf32>
    %cst = arith.constant 0.000000e+00 : f32
    %1 = vector.broadcast %cst : f32 to vector<2x8xf32>
    %2 = vector.extract_strided_slice %0 {offsets = [0, 0], sizes = [2, 120], strides = [1, 1]} : vector<2x128xf32> to vector<2x120xf32>
    %3 = tpu.concatenate %1, %2 in 1 : vector<2x8xf32>, vector<2x120xf32> -> vector<2x128xf32>
    %4 = arith.addf %0, %3 : vector<2x128xf32>
    %cst_1 = arith.constant 0.000000e+00 : f32
    %5 = vector.broadcast %cst_1 : f32 to vector<2x16xf32>
    %6 = vector.extract_strided_slice %4 {offsets = [0, 0], sizes = [2, 112], strides = [1, 1]} : vector<2x128xf32> to vector<2x112xf32>
    %7 = tpu.concatenate %5, %6 in 1 : vector<2x16xf32>, vector<2x112xf32> -> vector<2x128xf32>
    %8 = arith.addf %4, %7 : vector<2x128xf32>
    %cst_2 = arith.constant 0.000000e+00 : f32
    %9 = vector.broadcast %cst_2 : f32 to vector<2x32xf32>
    %10 = vector.extract_strided_slice %8 {offsets = [0, 0], sizes = [2, 96], strides = [1, 1]} : vector<2x128xf32> to vector<2x96xf32>
    %11 = tpu.concatenate %9, %10 in 1 : vector<2x32xf32>, vector<2x96xf32> -> vector<2x128xf32>
    %12 = arith.addf %8, %11 : vector<2x128xf32>
    %cst_3 = arith.constant 0.000000e+00 : f32
    %13 = vector.broadcast %cst_3 : f32 to vector<2x64xf32>
    %14 = vector.extract_strided_slice %12 {offsets = [0, 0], sizes = [2, 64], strides = [1, 1]} : vector<2x128xf32> to vector<2x64xf32>
    %15 = tpu.concatenate %13, %14 in 1 : vector<2x64xf32>, vector<2x64xf32> -> vector<2x128xf32>
    %16 = arith.addf %12, %15 : vector<2x128xf32>
    %17 = vector.extract_strided_slice %0 {offsets = [0, 0], sizes = [2, 8], strides = [1, 1]} : vector<2x128xf32> to vector<2x8xf32>
    %18 = vector.extract_strided_slice %0 {offsets = [0, 120], sizes = [2, 8], strides = [1, 1]} : vector<2x128xf32> to vector<2x8xf32>
    %19 = vector.extract_strided_slice %16 {offsets = [0, 120], sizes = [2, 8], strides = [1, 1]} : vector<2x128xf32> to vector<2x8xf32>
    %20 = vector.extract_strided_slice %16 {offsets = [0, 16], sizes = [2, 112], strides = [1, 1]} : vector<2x128xf32> to vector<2x112xf32>
    %21 = tpu.concatenate %20, %19, %19 in 1 : vector<2x112xf32>, vector<2x8xf32>, vector<2x8xf32> -> vector<2x128xf32>
    %cst_4 = arith.constant 0.000000e+00 : f32
    %22 = vector.broadcast %cst_4 : f32 to vector<2x24xf32>
    %23 = vector.extract_strided_slice %16 {offsets = [0, 0], sizes = [2, 104], strides = [1, 1]} : vector<2x128xf32> to vector<2x104xf32>
    %24 = tpu.concatenate %22, %23 in 1 : vector<2x24xf32>, vector<2x104xf32> -> vector<2x128xf32>
    %cst_5 = arith.constant 2.000000e+00 : f32
    %25 = vector.broadcast %cst_5 : f32 to vector<2x8xf32>
    %26 = arith.mulf %25, %17 : vector<2x8xf32>
    %cst_6 = arith.constant 1.000000e+00 : f32
    %27 = vector.broadcast %cst_6 : f32 to vector<2x8xf32>
    %28 = arith.mulf %27, %17 : vector<2x8xf32>
    %29 = tpu.concatenate %26, %28 in 1 : vector<2x8xf32>, vector<2x8xf32> -> vector<2x16xf32>
    %cst_7 = arith.constant 1.000000e+00 : f32
    %30 = vector.broadcast %cst_7 : f32 to vector<2x8xf32>
    %31 = arith.mulf %30, %18 : vector<2x8xf32>
    %cst_8 = arith.constant 2.000000e+00 : f32
    %32 = vector.broadcast %cst_8 : f32 to vector<2x8xf32>
    %33 = arith.mulf %32, %18 : vector<2x8xf32>
    %34 = tpu.concatenate %31, %33 in 1 : vector<2x8xf32>, vector<2x8xf32> -> vector<2x16xf32>
    %cst_9 = arith.constant 0.000000e+00 : f32
    %35 = vector.broadcast %cst_9 : f32 to vector<2x96xf32>
    %36 = tpu.concatenate %29, %35, %34 in 1 : vector<2x16xf32>, vector<2x96xf32>, vector<2x16xf32> -> vector<2x128xf32>
    %37 = arith.subf %21, %24 : vector<2x128xf32>
    %38 = arith.addf %37, %36 : vector<2x128xf32>
    %cst_10 = arith.constant 2.000000e-01 : f32
    %39 = vector.broadcast %cst_10 : f32 to vector<2x128xf32>
    %40 = arith.mulf %38, %39 : vector<2x128xf32>
    %c0_11 = arith.constant 0 : index
    %c0_12 = arith.constant 0 : index
    %41 = vector.load %arg3[%c0_11, %c0_12] : memref<2x128xf32, #tpu.memory_space<vmem>>, vector<2x128xf32>
    tpu.vector_store %arg3[%c0_11, %c0_12], %40 {strides = array<i32>} : memref<2x128xf32, #tpu.memory_space<vmem>>, vector<2x128xf32>,
    %42 = arith.subf %0, %40 : vector<2x128xf32>
    %c0_13 = arith.constant 0 : index
    %c0_14 = arith.constant 0 : index
    %43 = vector.load %arg2[%c0_13, %c0_14] : memref<2x128xf32, #tpu.memory_space<vmem>>, vector<2x128xf32>
    tpu.vector_store %arg2[%c0_13, %c0_14], %42 {strides = array<i32>} : memref<2x128xf32, #tpu.memory_space<vmem>>, vector<2x128xf32>,
    return
  }
  func.func @transform_0(%arg0: i32) -> (i32, i32) {
    %c0_i32 = arith.constant 0 : i32
    %c0_i32_0 = arith.constant 0 : i32
    return %arg0, %c0_i32 : i32, i32
  }
  func.func @transform_1(%arg0: i32) -> (i32, i32) {
    %c0_i32 = arith.constant 0 : i32
    %c0_i32_0 = arith.constant 0 : i32
    return %arg0, %c0_i32 : i32, i32
  }
  func.func @transform_2(%arg0: i32) -> (i32, i32) {
    %c0_i32 = arith.constant 0 : i32
    %c0_i32_0 = arith.constant 0 : i32
    return %arg0, %c0_i32 : i32, i32
  }
}

</mosaic_0001>

<bundles_post_ra>
// kernel: tpu_custom_call.1
= control target key start
LH: loop header
LB: loop body
LE: loop exit
PB: predicated region body
PF: predicated region fallthrough
CT: control target
= control target key end

     0   :  { %8 = vsyncpa [#allocation3], 0  ;;  %s256_s0 = inlined_call_operand.hbm [shape: f32[2,128], index: 0, kind: input, shape index: {}]   ;;  %s257_s1 = inlined_call_operand.hbm [shape: f32[2,128], index: 1, kind: output, shape index: {0}]   ;;  %s258_s2 = inlined_call_operand.hbm [shape: f32[2,128], index: 2, kind: output, shape index: {1}]  }
   0x1   :  { %9 = vsyncpa [#allocation4], 0 }
   0x2   :  { %10 = vsyncpa [#allocation7], 0  ;;  %s16_s11 = sshll.u32 %s256_s0, 4  ;;  %s211_s12 = smov [#allocation2]   ;;  %s17_s11 = int_to_ptr.hbm [resolvable:$true] %s16_s11 }
   0x3   :  { %s18_s13 = sshll.u32 %s211_s12, 4  ;;  %s19_s13 = int_to_ptr.vmem [resolvable:$true] %s18_s13 }
   0x4   :  { %21 = dma.hbm_to_vmem [thread:$0]  %s17_s11, 32, %s19_s13, [#allocation3]  }
   0x5   :  { %205 = dma.done.wait [#allocation3], 32  }
   0x6   :  { %206 = vsyncadd [#allocation3], 4294967264  ;;  %v239_v0 = vld [vmem:[#allocation2] sm:$0x3]  ;;  %s212_s14 = smov 8   ;;  %s213_s15 = smov 16  }
   0x7   :  { %28 = vrot.lane.b32.xlu0 %v239_v0, %s212_s14  ;;  %v71_v1 = vmul.f32 2.0, %v239_v0  ;;  %vm31_vm0 = vcmask 64512   ;;  %vm38_vm1 = vcmask 130048   ;;  %s214_s0 = smov 32   ;;  %vm45_vm2 = vcmask 261120   ;;  %s215_s16 = smov 64  }
   0x8   :  { %vm52_vm3 = vcmask 523264   ;;  %s216_s17 = smov 24   ;;  %s217_s18 = smov 120   ;;  %vm69_vm4 = vcmask 195584   ;;  %vm64_vm5 = vcmask 982016   ;;  %vm62_vm6 = vcmask 916480  }
   0x9   :  { %74 = vrot.lane.b32.xlu2 %v71_v1, %s213_s15  ;;  %s218_s19 = smov 112   ;;  %s219_s20 = smov [#allocation6]  }
   0xa   :  { %s106_s21 = sshll.u32 %s219_s20, 4  ;;  %s108_s24 = sshll.u32 %s258_s2, 4  ;;  %s107_s21 = int_to_ptr.vmem [resolvable:$true] %s106_s21  ;;  %s109_s24 = int_to_ptr.hbm [resolvable:$true] %s108_s24 }
   0xb   :  { %s220_s25 = smov [#allocation5]   ;;  %s97_s29 = sshll.u32 %s257_s1, 4  ;;  %s98_s29 = int_to_ptr.hbm [resolvable:$true] %s97_s29 }
   0xc   :  { %s95_s26 = sshll.u32 %s220_s25, 4  ;;  %s96_s26 = int_to_ptr.vmem [resolvable:$true] %s95_s26 }
  0x63   :  { %v75_v14 = vpop.permute.xlu2 %74 }
  0x79   :  { %v29_v2 = vpop.permute.xlu0 %28 }
  0x7a   :  { %v32_v3 = vsel %vm31_vm0, 0.0, %v29_v2  ;;  %v77_v15 = vsel %vm31_vm0, %v29_v2, %v75_v14  ;;  %v72_v17 = vsel %vm31_vm0, %v71_v1, %v29_v2 }
  0x7b   :  { %v33_v4 = vadd.f32 %v32_v3, %v239_v0  ;;  %v82_v24 = vsel %vm38_vm1, %v72_v17, 0.0 }
  0x7d   :  { %35 = vrot.lane.b32.xlu0 %v33_v4, %s213_s15 }
  0xef   :  { %v36_v5 = vpop.permute.xlu0 %35 }
  0xf0   :  { %v39_v6 = vsel %vm38_vm1, 0.0, %v36_v5 }
  0xf1   :  { %v40_v7 = vadd.f32 %v39_v6, %v33_v4 }
  0xf3   :  { %42 = vrot.lane.b32.xlu1 %v40_v7, %s214_s0 }
 0x165   :  { %v43_v8 = vpop.permute.xlu1 %42 }
 0x166   :  { %v46_v9 = vsel %vm45_vm2, 0.0, %v43_v8 }
 0x167   :  { %v47_v10 = vadd.f32 %v46_v9, %v40_v7 }
 0x169   :  { %49 = vrot.lane.b32.xlu1 %v47_v10, %s215_s16 }
 0x1db   :  { %v50_v11 = vpop.permute.xlu1 %49 }
 0x1dc   :  { %v53_v12 = vsel %vm52_vm3, 0.0, %v50_v11 }
 0x1dd   :  { %v54_v13 = vadd.f32 %v53_v12, %v47_v10 }
 0x1df   :  { %66 = vrot.lane.b32.xlu1 %v54_v13, %s216_s17  ;;  %59 = vrot.lane.b32.xlu0 %v54_v13, %s217_s18 }
 0x1e0   :  { %56 = vrot.lane.b32.xlu2 %v54_v13, %s218_s19 }
 0x1e8   :  { %79 = vrot.lane.b32.xlu2 %v77_v15, %s218_s19 }
 0x23a   :  { %v57_v16 = vpop.permute.xlu2 %56 }
 0x242   :  { %v80_v20 = vpop.permute.xlu2 %79 }
 0x243   :  { %v83_v26 = vsel %vm62_vm6, %v82_v24, %v80_v20 }
 0x251   :  { %v67_v18 = vpop.permute.xlu1 %66  ;;  %v60_v19 = vpop.permute.xlu0 %59 }
 0x252   :  { %v70_v21 = vsel %vm69_vm4, 0.0, %v67_v18  ;;  %v63_v22 = vsel %vm62_vm6, %v57_v16, %v60_v19 }
 0x253   :  { %v65_v23 = vsel %vm64_vm5, %v63_v22, %v54_v13 }
 0x254   :  { %v84_v25 = vsub.f32 %v65_v23, %v70_v21 }
 0x256   :  { %v85_v27 = vadd.f32 %v84_v25, %v83_v26 }
 0x258   :  { %v86_v28 = vmul.f32 0.2, %v85_v27 }
 0x25a   :  { %v88_v29 = vsub.f32 %v239_v0, %v86_v28  ;;  %87 = vst [vmem:[#allocation6] sm:$0x3] %v86_v28 }
 0x25b   :  { %111 = dma.vmem_to_hbm [thread:$0]  %s107_s21, 32, %s109_s24, [#allocation7]  }
 0x25c   :  { %89 = vst [vmem:[#allocation5] sm:$0x3] %v88_v29 }
 0x25d   :  { %100 = dma.vmem_to_hbm [thread:$0]  %s96_s26, 32, %s98_s29, [#allocation4]  }
 0x25e   :  { %207 = dma.done.wait [#allocation4], 32  }
 0x25f   :  { %208 = vsyncadd [#allocation4], 4294967264 }
 0x260   :  { %209 = dma.done.wait [#allocation7], 32  }
 0x261   :  { %210 = vsyncadd [#allocation7], 4294967264 }
 0x262   :  { %120 = vsyncpa [#allocation3], 1 }
 0x263   :  { %121 = vsyncpa [#allocation4], 1 }
 0x264   :  { %122 = vsyncpa [#allocation7], 1 }

</bundles_post_ra>
